<compile_context>
chip_gen: v5e
topology: v5e:2x2
jax: 0.10.0
libtpu: 0.0.40
codegen_flags: <defaults>
</compile_context>

<pallas_src>
import functools

import jax
import jax.numpy as jnp
from jax.experimental import pallas as pl
from jax.experimental.pallas import tpu as pltpu


def _round_up(x: int, m: int) -> int:
    return ((x + m - 1) // m) * m


def _residual_kernel(ab_ref,                       # scalar-prefetch: [alpha, beta] (SMEM)
                     x_ref, w_ref, b_ref, bits_ref,  # inputs (VMEM tiles)
                     o_ref,                        # output (VMEM tile)
                     normed_ref,                   # scratch: bf16 LN(x) row tile
                     *, eps: float, drop_p: float, training: bool,
                     tn: int, approx_recip: bool):
    j = pl.program_id(1)

    # ---- LayerNormalization, computed once per row tile (j == 0) ----
    @pl.when(j == 0)
    def _():
        x = x_ref[...].astype(jnp.float32)                 # (TM, D)
        d = x.shape[-1]
        mean = jnp.mean(x, axis=-1, keepdims=True)
        centered = x - mean
        var_unbiased = jnp.sum(centered * centered, axis=-1, keepdims=True) * (
            1.0 / (d - 1))                                 # torch .std() default (ddof=1)
        std = jnp.sqrt(var_unbiased)
        denom = std + jnp.float32(eps)
        if approx_recip:
            inv = pl.reciprocal(denom, approx=True)        # EUP slot on TPU
        else:
            inv = 1.0 / denom
        alpha = ab_ref[0]
        beta = ab_ref[1]
        normed = alpha * centered * inv + beta
        normed_ref[...] = normed.astype(normed_ref.dtype)  # bf16 for the MXU

    # ---- sublayer: Linear(D, D), column tile j, bf16 MXU / f32 accumulate ----
    y = jnp.dot(normed_ref[...], w_ref[...],
                preferred_element_type=jnp.float32)        # (TM, TN)
    y = y + b_ref[...].astype(jnp.float32)                 # bias broadcast (1, TN)

    # ---- Dropout (inverted dropout, integer-domain mask) ----
    if training and drop_p > 0.0:
        thresh = jnp.uint32(min(int(round(drop_p * 4294967296.0)), 4294967295))
        keep = bits_ref[...] >= thresh                     # P(keep) = 1 - p
        y = jnp.where(keep, y * jnp.float32(1.0 / (1.0 - drop_p)), jnp.float32(0.0))

    # ---- residual add (slice the resident x row tile at this column tile) ----
    col0 = pl.multiple_of(j * tn, tn)
    x_cols = x_ref[:, pl.ds(col0, tn)].astype(jnp.float32)
    o_ref[...] = (x_cols + y).astype(o_ref.dtype)


def residual_connection(x, w, b, alpha, bias, *, eps=1e-6, drop_p=0.1,
                        training=True, rng_key=None, tm=256, tn=512):
    """x: (B, S, D) f32; w: (D, D); b: (D,); alpha/bias: scalar LN params."""
    B, S, D = x.shape
    assert D > 1, "unbiased std needs D > 1"
    assert 0.0 <= drop_p < 1.0
    rows = B * S

    # Row tile: multiple of 8 sublanes, capped by requested tm; pad rows up.
    tm_eff = max(8, (min(tm, _round_up(rows, 8)) // 8) * 8)
    rows_pad = pl.cdiv(rows, tm_eff) * tm_eff

    # Output-column tile: lane-dense multiple of 128 dividing D when possible.
    tn_eff = D
    if D % 128 == 0:
        cands = [c for c in range(128, D + 1, 128) if D % c == 0 and c <= max(tn, 128)]
        if cands:
            tn_eff = cands[-1]

    x2d = x.reshape(rows, D)
    if rows_pad != rows:
        x2d = jnp.pad(x2d, ((0, rows_pad - rows), (0, 0)))

    w_bf16 = w.astype(jnp.bfloat16)                 # halves weight DMA + VMEM footprint
    b2d = b.reshape(1, D).astype(jnp.float32)
    ab = jnp.array([alpha, bias], dtype=jnp.float32)

    # Dropout bits generated once per call, per element -> mask is independent
    # of tile sizes and needs no in-kernel PRNG.
    if rng_key is None:
        rng_key = jax.random.PRNGKey(0)
    bits = jax.random.bits(rng_key, (rows_pad, D), dtype=jnp.uint32)

    approx_recip = jax.default_backend() == "tpu"

    kernel = functools.partial(
        _residual_kernel, eps=float(eps), drop_p=float(drop_p),
        training=bool(training), tn=tn_eff, approx_recip=approx_recip)

    grid = (rows_pad // tm_eff, D // tn_eff)

    out2d = pl.pallas_call(
        kernel,
        out_shape=jax.ShapeDtypeStruct((rows_pad, D), x.dtype),
        grid_spec=pltpu.PrefetchScalarGridSpec(
            num_scalar_prefetch=1,                       # [alpha, beta] in SMEM
            grid=grid,
            in_specs=[
                pl.BlockSpec((tm_eff, D), lambda i, j, ab_s: (i, 0)),      # x rows (resident over j)
                pl.BlockSpec((D, tn_eff), lambda i, j, ab_s: (0, j)),      # W column tile (bf16)
                pl.BlockSpec((1, tn_eff), lambda i, j, ab_s: (0, j)),      # bias tile
                pl.BlockSpec((tm_eff, tn_eff), lambda i, j, ab_s: (i, j)),  # dropout bits
            ],
            out_specs=pl.BlockSpec((tm_eff, tn_eff), lambda i, j, ab_s: (i, j)),
            scratch_shapes=[pltpu.VMEM((tm_eff, D), jnp.bfloat16)],        # cached LN(x)
        ),
        compiler_params=pltpu.CompilerParams(
            dimension_semantics=("parallel", "arbitrary"),  # row tiles across TCs; j sequential (scratch reuse)
            vmem_limit_bytes=48 * 1024 * 1024,
        ),
        # Residual stream aliases the output buffer (operand index counts the
        # scalar-prefetch arg, so x2d is operand 1).
        input_output_aliases={1: 0},
    )(ab, x2d, w_bf16, b2d, bits)

    return out2d[:rows].reshape(B, S, D)


if __name__ == "__main__":
    key = jax.random.PRNGKey(0)
    k_x, k_w, k_b, k_drop = jax.random.split(key, 4)

    B, S, D = 2, 8, 128          # small, lane-dense hidden size
    x = jax.random.normal(k_x, (B, S, D), dtype=jnp.float32)

    # Deterministic "sublayer" = Linear(D, D)
    w = jax.random.normal(k_w, (D, D), dtype=jnp.float32) * (1.0 / jnp.sqrt(D))
    b = jax.random.normal(k_b, (D,), dtype=jnp.float32) * 0.01

    # LayerNormalization params at their nn.Parameter init values
    alpha = 1.0
    bias = 0.0

    out = residual_connection(x, w, b, alpha, bias,
                              eps=1e-6, drop_p=0.1, training=True,
                              rng_key=k_drop)
    jax.block_until_ready(out)
    assert out.shape == (B, S, D) and out.dtype == jnp.float32
    assert bool(jnp.all(jnp.isfinite(out)))
    print("KERNEL_OK")
</pallas_src>

<mosaic_0001>
module attributes {stable_mosaic.version = 11 : i64} {
  func.func @_residual_kernel(%arg0: i32, %arg1: i32, %arg2: memref<2xf32, #tpu.memory_space<smem>>, %arg3: memref<16x128xf32, #tpu.memory_space<vmem>>, %arg4: memref<128x128xbf16, #tpu.memory_space<vmem>>, %arg5: memref<1x128xf32, #tpu.memory_space<vmem>>, %arg6: memref<16x128xi32, #tpu.memory_space<vmem>>, %arg7: memref<16x128xf32, #tpu.memory_space<vmem>>, %arg8: memref<16x128xbf16, #tpu.memory_space<vmem>>) attributes {dimension_semantics = [#tpu.dimension_semantics<parallel>, #tpu.dimension_semantics<arbitrary>], iteration_bounds = array<i64: 1, 1>, scalar_prefetch = 1 : i64, scratch_operands = 1 : i64, tpu.core_type = #tpu.core_type<tc>, window_params = [{transform_indices = @transform_0, window_bounds = array<i64: 16, 128>}, {transform_indices = @transform_1, window_bounds = array<i64: 128, 128>}, {transform_indices = @transform_2, window_bounds = array<i64: 1, 128>}, {transform_indices = @transform_3, window_bounds = array<i64: 16, 128>}, {transform_indices = @transform_4, window_bounds = array<i64: 16, 128>}]} {
    %c0_i32 = arith.constant 0 : i32
    %0 = arith.cmpi eq, %arg1, %c0_i32 : i32
    %1 = arith.extui %0 : i1 to i32
    %c0_i32_0 = arith.constant 0 : i32
    %2 = arith.cmpi ne, %1, %c0_i32_0 : i32
    scf.if %2 {
      %c0_13 = arith.constant 0 : index
      %c0_14 = arith.constant 0 : index
      %22 = vector.load %arg3[%c0_13, %c0_14] : memref<16x128xf32, #tpu.memory_space<vmem>>, vector<16x128xf32>
      %cst_15 = arith.constant dense<0.000000e+00> : vector<16xf32>
      %23 = vector.multi_reduction <add>, %22, %cst_15 [1] : vector<16x128xf32> to vector<16xf32>
      %24 = vector.shape_cast %23 : vector<16xf32> to vector<16x1xf32>
      %cst_16 = arith.constant 1.280000e+02 : f32
      %25 = vector.broadcast %cst_16 : f32 to vector<16x1xf32>
      %26 = arith.divf %24, %25 : vector<16x1xf32>
      %27 = vector.broadcast %26 : vector<16x1xf32> to vector<16x128xf32>
      %28 = arith.subf %22, %27 : vector<16x128xf32>
      %29 = arith.mulf %28, %28 : vector<16x128xf32>
      %cst_17 = arith.constant dense<0.000000e+00> : vector<16xf32>
      %30 = vector.multi_reduction <add>, %29, %cst_17 [1] : vector<16x128xf32> to vector<16xf32>
      %31 = vector.shape_cast %30 : vector<16xf32> to vector<16x1xf32>
      %cst_18 = arith.constant 0.00787401571 : f32
      %32 = vector.broadcast %cst_18 : f32 to vector<16x1xf32>
      %33 = arith.mulf %31, %32 : vector<16x1xf32>
      %34 = math.sqrt %33 : vector<16x1xf32>
      %cst_19 = arith.constant 9.99999997E-7 : f32
      %35 = vector.broadcast %cst_19 : f32 to vector<16x1xf32>
      %36 = arith.addf %34, %35 : vector<16x1xf32>
      %cst_20 = arith.constant 1.000000e+00 : f32
      %37 = vector.broadcast %cst_20 : f32 to vector<16x1xf32>
      %38 = arith.divf %37, %36 : vector<16x1xf32>
      %c0_21 = arith.constant 0 : index
      %39 = memref.load %arg2[%c0_21] : memref<2xf32, #tpu.memory_space<smem>>
      %c1 = arith.constant 1 : index
      %40 = memref.load %arg2[%c1] : memref<2xf32, #tpu.memory_space<smem>>
      %41 = vector.broadcast %39 : f32 to vector<16x128xf32>
      %42 = arith.mulf %41, %28 : vector<16x128xf32>
      %43 = vector.broadcast %38 : vector<16x1xf32> to vector<16x128xf32>
      %44 = arith.mulf %42, %43 : vector<16x128xf32>
      %45 = vector.broadcast %40 : f32 to vector<16x128xf32>
      %46 = arith.addf %44, %45 : vector<16x128xf32>
      %47 = arith.truncf %46 : vector<16x128xf32> to vector<16x128xbf16>
      %c0_22 = arith.constant 0 : index
      %c0_23 = arith.constant 0 : index
      %48 = vector.load %arg8[%c0_22, %c0_23] : memref<16x128xbf16, #tpu.memory_space<vmem>>, vector<16x128xbf16>
      tpu.vector_store %arg8[%c0_22, %c0_23], %47 {strides = array<i32>} : memref<16x128xbf16, #tpu.memory_space<vmem>>, vector<16x128xbf16>,
    } else {
    }
    %c0 = arith.constant 0 : index
    %c0_1 = arith.constant 0 : index
    %3 = vector.load %arg8[%c0, %c0_1] : memref<16x128xbf16, #tpu.memory_space<vmem>>, vector<16x128xbf16>
    %c0_2 = arith.constant 0 : index
    %c0_3 = arith.constant 0 : index
    %4 = vector.load %arg4[%c0_2, %c0_3] : memref<128x128xbf16, #tpu.memory_space<vmem>>, vector<128x128xbf16>
    %cst = arith.constant dense<0.000000e+00> : vector<16x128xf32>
    %5 = tpu.matmul %3, %4, %cst {dimension_numbers = #tpu.dot_dimension_numbers<[1], [0], [0], [1], [0, 0, 1, 1], [], []>} : vector<16x128xbf16>, vector<128x128xbf16>, vector<16x128xf32> -> vector<16x128xf32>
    %c0_4 = arith.constant 0 : index
    %c0_5 = arith.constant 0 : index
    %6 = vector.load %arg5[%c0_4, %c0_5] : memref<1x128xf32, #tpu.memory_space<vmem>>, vector<1x128xf32>
    %7 = vector.broadcast %6 : vector<1x128xf32> to vector<16x128xf32>
    %8 = arith.addf %5, %7 : vector<16x128xf32>
    %c0_6 = arith.constant 0 : index
    %c0_7 = arith.constant 0 : index
    %9 = vector.load %arg6[%c0_6, %c0_7] : memref<16x128xi32, #tpu.memory_space<vmem>>, vector<16x128xi32>
    %c429496730_i32 = arith.constant 429496730 : i32
    %10 = vector.broadcast %c429496730_i32 : i32 to vector<16x128xi32>
    %11 = arith.cmpi uge, %9, %10 : vector<16x128xi32>
    %cst_8 = arith.constant 1.11111116 : f32
    %12 = vector.broadcast %cst_8 : f32 to vector<16x128xf32>
    %13 = arith.mulf %8, %12 : vector<16x128xf32>
    %cst_9 = arith.constant 0.000000e+00 : f32
    %14 = vector.broadcast %cst_9 : f32 to vector<16x128xf32>
    %15 = arith.select %11, %13, %14 : vector<16x128xi1>, vector<16x128xf32>
    %c128_i32 = arith.constant 128 : i32
    %16 = arith.muli %arg1, %c128_i32 : i32
    %17 = tpu.assume_multiple %16, 128 : i32
    %c0_10 = arith.constant 0 : index
    %18 = arith.index_cast %17 : i32 to index
    %19 = vector.load %arg3[%c0_10, %18] : memref<16x128xf32, #tpu.memory_space<vmem>>, vector<16x128xf32>
    %20 = arith.addf %19, %15 : vector<16x128xf32>
    %c0_11 = arith.constant 0 : index
    %c0_12 = arith.constant 0 : index
    %21 = vector.load %arg7[%c0_11, %c0_12] : memref<16x128xf32, #tpu.memory_space<vmem>>, vector<16x128xf32>
    tpu.vector_store %arg7[%c0_11, %c0_12], %20 {strides = array<i32>} : memref<16x128xf32, #tpu.memory_space<vmem>>, vector<16x128xf32>,
    return
  }
  func.func @transform_0(%arg0: i32, %arg1: i32, %arg2: memref<2xf32, #tpu.memory_space<smem>>) -> (i32, i32) {
    %c0_i32 = arith.constant 0 : i32
    %c0_i32_0 = arith.constant 0 : i32
    return %arg0, %c0_i32 : i32, i32
  }
  func.func @transform_1(%arg0: i32, %arg1: i32, %arg2: memref<2xf32, #tpu.memory_space<smem>>) -> (i32, i32) {
    %c0_i32 = arith.constant 0 : i32
    %c0_i32_0 = arith.constant 0 : i32
    return %c0_i32, %arg1 : i32, i32
  }
  func.func @transform_2(%arg0: i32, %arg1: i32, %arg2: memref<2xf32, #tpu.memory_space<smem>>) -> (i32, i32) {
    %c0_i32 = arith.constant 0 : i32
    %c0_i32_0 = arith.constant 0 : i32
    return %c0_i32, %arg1 : i32, i32
  }
  func.func @transform_3(%arg0: i32, %arg1: i32, %arg2: memref<2xf32, #tpu.memory_space<smem>>) -> (i32, i32) {
    %c0_i32 = arith.constant 0 : i32
    return %arg0, %arg1 : i32, i32
  }
  func.func @transform_4(%arg0: i32, %arg1: i32, %arg2: memref<2xf32, #tpu.memory_space<smem>>) -> (i32, i32) {
    %c0_i32 = arith.constant 0 : i32
    return %arg0, %arg1 : i32, i32
  }
}

</mosaic_0001>

<bundles_post_ra>
// kernel: tpu_custom_call.1
= control target key start
LH: loop header
LB: loop body
LE: loop exit
PB: predicated region body
PF: predicated region fallthrough
CT: control target
= control target key end

     0   :  { %s456_s21 = smov [#allocation4]   ;;  %s542_s0 = inlined_call_operand.vmem [shape: f32[2], index: 0, kind: input, shape index: {}]   ;;  %s543_s1 = inlined_call_operand.hbm [shape: f32[16,128], index: 1, kind: input, shape index: {}, may-alias: {1,5}]   ;;  %s544_s2 = inlined_call_operand.hbm [shape: bf16[128,128], index: 2, kind: input, shape index: {}]   ;;  %s545_s3 = inlined_call_operand.vmem [shape: f32[1,128], index: 3, kind: input, shape index: {}]   ;;  %s546_s4 = inlined_call_operand.vmem [shape: u32[16,128], index: 4, kind: input, shape index: {}]   ;;  %s547_s5 = inlined_call_operand.hbm [shape: f32[16,128], index: 5, kind: output, shape index: {}, may-alias: {1,5}]  }
   0x1   :  { %s11_s20 = sshll.u32 %s542_s0, 4  ;;  %s12_s20 = int_to_ptr.vmem [resolvable:$true] %s11_s20 }
   0x2   :  { %14 = dma.vmem_to_smem %s12_s20, 16, %s456_s21, [#allocation3] }
   0x3   :  { %448 = dma.done.wait [#allocation3], 16 }
   0x4   :  { %449 = vsyncadd [#allocation3], 4294967280 }
   0x5   :  { %17 = sfence }
   0x6   :  { %18 = vsyncpa [#allocation6], 0 }
   0x7   :  { %19 = vsyncpa [#allocation9], 0 }
   0x8   :  { %20 = vsyncpa [#allocation7], 0  ;;  %s25_s24 = sshll.u32 %s543_s1, 4  ;;  %s457_s25 = smov [#allocation5]   ;;  %s26_s24 = int_to_ptr.hbm [resolvable:$true] %s25_s24 }
   0x9   :  { %s27_s26 = sshll.u32 %s457_s25, 4  ;;  %s38_s0 = sshll.u32 %s544_s2, 4  ;;  %s28_s26 = int_to_ptr.vmem [resolvable:$true] %s27_s26  ;;  %s39_s0 = int_to_ptr.hbm [resolvable:$true] %s38_s0 }
   0xa   :  { %s458_s29 = smov 128   ;;  %s459_s30 = smov 8  }
   0xb   :  { %33 = dma.hbm_to_vmem [thread:$0]  %s26_s24, 256, %s28_s26, [#allocation6], %s458_s29, %s458_s29, %s459_s30  }
   0xc   :  { %s460_s6 = smov [#allocation8]   ;;  %s461_s8 = smov 64  }
   0xd   :  { %s40_s7 = sshll.u32 %s460_s6, 4  ;;  %s462_s1 = smov 4   ;;  %s41_s7 = int_to_ptr.vmem [resolvable:$true] %s40_s7 }
   0xe   :  { %46 = dma.hbm_to_vmem [thread:$0]  %s39_s0, 1024, %s41_s7, [#allocation9], %s461_s8, %s461_s8, %s462_s1  }
   0xf   :  { %450 = dma.done.wait [#allocation6], 256  }
  0x10   :  { %451 = vsyncadd [#allocation6], 4294967040 }
  0x11   :  { %452 = dma.done.wait [#allocation9], 1024  }
  0x12   :  { %453 = vsyncadd [#allocation9], 4294966272  ;;  %v507_v0 = vld [vmem:[#allocation5] sm:$0xff]  ;;  %v510_v1 = vld [vmem:[#allocation5 + $0x8] sm:$0xff]  ;;  %v463_v2 = vmov 128.0   ;;  %s144_s2 = sld [smem:[#allocation4]] }
  0x13   :  { %65 = vadd.xlane.f32.xlu0 %v507_v0  ;;  %354 = vrcp.f32 %v463_v2  ;;  %v338_v19 = vld [vmem:[#allocation8 + $0x38] sm:$0xff]  ;;  %v337_v20 = vld [vmem:[#allocation8 + $0x30] sm:$0xff]  ;;  %v336_v25 = vld [vmem:[#allocation8 + $0x28] sm:$0xff]  ;;  %s291_s9 = sld [smem:[#allocation4 + $0x1]]  ;;  %s464_s16 = smov [#allocation10]  }
  0x14   :  { %234 = vmatpush.bf16.msra.mxu0 %v338_v19  ;;  %v335_v28 = vld [vmem:[#allocation8 + $0x20] sm:$0xff]  ;;  %v334_v33 = vld [vmem:[#allocation8 + $0x18] sm:$0xff]  ;;  %v333_v37 = vld [vmem:[#allocation8 + $0x10] sm:$0xff]  ;;  %s276_s19 = sshll.u32 %s547_s5, 4  ;;  %s277_s19 = int_to_ptr.hbm [resolvable:$true] %s276_s19 }
  0x15   :  { %v332_v43 = vld [vmem:[#allocation8 + $0x8] sm:$0xff]  ;;  %v331_v46 = vld [vmem:[#allocation8] sm:$0xff] }
  0x18   :  { %235 = vmatpush.bf16.msra.mxu0 %v337_v20  ;;  %v146_v62 = vstv %s144_s2 }
  0x19   :  { %v355_v3 = vpop.eup %354 }
  0x1a   :  { %v70_v4 = vmul.f32 128.0, %v355_v3  ;;  %vm74_vm0 = vweird.f32 %v355_v3 }
  0x1b   :  { %67 = vadd.xlane.f32.xlu0 %v510_v1 }
  0x1c   :  { %v71_v5 = vsub.f32 1.0, %v70_v4  ;;  %236 = vmatpush.bf16.msra.mxu0 %v336_v25  ;;  %v249_v25 = vld [vmem:[%s546_s4 + $0x8] sm:$0xff] }
  0x1e   :  { %v72_v6 = vmul.f32 %v355_v3, %v71_v5 }
  0x20   :  { %v73_v7 = vadd.f32 %v355_v3, %v72_v6  ;;  %237 = vmatpush.bf16.msra.mxu0 %v335_v28  ;;  %v329_v28 = vxor.u32 2147483648, %v249_v25 }
  0x22   :  { %v75_v8 = vsel %vm74_vm0, %v355_v3, %v73_v7  ;;  %vm255_vm14 = vcmp.ge.s32.totalorder %v329_v28, 2576980378 }
  0x24   :  { %238 = vmatpush.bf16.msra.mxu0 %v334_v33 }
  0x28   :  { %239 = vmatpush.bf16.msra.mxu0 %v333_v37 }
  0x2c   :  { %240 = vmatpush.bf16.msra.mxu0 %v332_v43 }
  0x30   :  { %241 = vmatpush.bf16.msra.mxu0 %v331_v46 }
  0x86   :  { %v66_v9 = vpop.xlane.xlu0 %65 }
  0x87   :  { %v76_v10 = vmul.f32 %v75_v8, %v66_v9 }
  0x89   :  { %v514_v11 = vsub.f32 %v507_v0, %v76_v10 }
  0x8b   :  { %v80_v12 = vmul.f32 %v514_v11, %v514_v11  ;;  %v147_v6 = vmul.f32 %v146_v62, %v514_v11  ;;  %v248_v11 = vld [vmem:[%s546_s4] sm:$0xff] }
  0x8d   :  { %82 = vadd.xlane.f32.xlu1 %v80_v12 }
  0x8e   :  { %v68_v13 = vpop.xlane.xlu0 %67 }
  0x8f   :  { %v77_v14 = vmul.f32 %v75_v8, %v68_v13 }
  0x91   :  { %v519_v15 = vsub.f32 %v510_v1, %v77_v14  ;;  %v151_v14 = vstv %s291_s9 }
  0x93   :  { %v81_v16 = vmul.f32 %v519_v15, %v519_v15  ;;  %v148_v9 = vmul.f32 %v146_v62, %v519_v15  ;;  %v353_v15 = vld [vmem:[%s545_s3] ss:$0 sm:$0xff]  ;;  %s274_s3 = sshll.u32 %s464_s16, 4  ;;  %s275_s3 = int_to_ptr.vmem [resolvable:$true] %s274_s3 }
  0x95   :  { %84 = vadd.xlane.f32.xlu1 %v81_v16 }
 0x100   :  { %v83_v17 = vpop.xlane.xlu1 %82 }
 0x101   :  { %v86_v18 = vmul.f32 0.007874016, %v83_v17 }
 0x103   :  { %356 = vrsqrt.f32 %v86_v18  ;;  %vm95_vm1 = vcmp.eq.f32.partialorder %v86_v18, inf  ;;  %v98_v36 = vand.u32 2147483648, %v86_v18  ;;  %vm97_vm2 = vcmp.eq.f32.partialorder %v86_v18, 0.0 }
 0x108   :  { %v85_v21 = vpop.xlane.xlu1 %84 }
 0x109   :  { %v357_v22 = vpop.eup %356  ;;  %v87_v23 = vmul.f32 0.007874016, %v85_v21  ;;  %v328_v21 = vxor.u32 2147483648, %v248_v11 }
 0x10a   :  { %v89_v24 = vmul.f32 %v357_v22, %v86_v18 }
 0x10b   :  { %358 = vrsqrt.f32 %v87_v23  ;;  %vm107_vm3 = vcmp.eq.f32.partialorder %v87_v23, inf  ;;  %v110_v47 = vand.u32 2147483648, %v87_v23  ;;  %vm109_vm4 = vcmp.eq.f32.partialorder %v87_v23, 0.0 }
 0x10c   :  { %v90_v26 = vmul.f32 %v357_v22, %v89_v24  ;;  %vm252_vm13 = vcmp.ge.s32.totalorder %v328_v21, 2576980378 }
 0x10e   :  { %v91_v27 = vmul.f32 0.5, %v90_v26 }
 0x110   :  { %v92_v29 = vsub.f32 1.5, %v91_v27 }
 0x111   :  { %v359_v30 = vpop.eup %358 }
 0x112   :  { %v93_v31 = vmul.f32 %v357_v22, %v92_v29  ;;  %v101_v32 = vmul.f32 %v359_v30, %v87_v23 }
 0x114   :  { %v94_v34 = vmul.f32 %v93_v31, %v86_v18  ;;  %v102_v35 = vmul.f32 %v359_v30, %v101_v32 }
 0x116   :  { %v96_v38 = vsel %vm95_vm1, %v86_v18, %v94_v34  ;;  %v103_v39 = vmul.f32 0.5, %v102_v35 }
 0x117   :  { %v99_v40 = vsel %vm97_vm2, %v98_v36, %v96_v38 }
 0x118   :  { %v112_v41 = vadd.f32 1e-06, %v99_v40  ;;  %v104_v42 = vsub.f32 1.5, %v103_v39 }
 0x11a   :  { %360 = vrcp.f32 %v112_v41  ;;  %v105_v44 = vmul.f32 %v359_v30, %v104_v42  ;;  %v125_v57 = vand.u32 2147483648, %v112_v41  ;;  %vm119_vm6 = vweird.f32 %v112_v41 }
 0x11b   :  { %v123_v58 = vand.u32 2147483647, %v112_v41 }
 0x11c   :  { %v106_v45 = vmul.f32 %v105_v44, %v87_v23  ;;  %v126_v63 = vor.u32 1.1754944e-38, %v125_v57 }
 0x11d   :  { %vm124_vm8 = vcmp.eq.f32.partialorder %v123_v58, 8.507059e+37 }
 0x11e   :  { %v108_v48 = vsel %vm107_vm3, %v87_v23, %v106_v45 }
 0x11f   :  { %v111_v50 = vsel %vm109_vm4, %v110_v47, %v108_v48 }
 0x120   :  { %v361_v49 = vpop.eup %360  ;;  %v113_v52 = vadd.f32 1e-06, %v111_v50 }
 0x121   :  { %v115_v51 = vmul.f32 %v361_v49, %v112_v41  ;;  %vm120_vm5 = vweird.f32 %v361_v49 }
 0x122   :  { %362 = vrcp.f32 %v113_v52  ;;  %vm121_vm7 = vmor %vm119_vm6, %vm120_vm5  ;;  %v140_v2 = vand.u32 2147483648, %v113_v52  ;;  %v138_v4 = vand.u32 2147483647, %v113_v52  ;;  %vm134_vm10 = vweird.f32 %v113_v52 }
 0x123   :  { %v116_v53 = vsub.f32 1.0, %v115_v51 }
 0x124   :  { %v141_v8 = vor.u32 1.1754944e-38, %v140_v2  ;;  %vm139_vm12 = vcmp.eq.f32.partialorder %v138_v4, 8.507059e+37 }
 0x125   :  { %v117_v54 = vmul.f32 %v361_v49, %v116_v53 }
 0x127   :  { %v118_v55 = vadd.f32 %v361_v49, %v117_v54 }
 0x128   :  { %v363_v56 = vpop.eup %362 }
 0x129   :  { %v130_v59 = vmul.f32 %v363_v56, %v113_v52  ;;  %v122_v60 = vsel %vm121_vm7, %v361_v49, %v118_v55  ;;  %vm135_vm9 = vweird.f32 %v363_v56 }
 0x12a   :  { %v127_v5 = vsel %vm124_vm8, %v126_v63, %v122_v60  ;;  %vm136_vm11 = vmor %vm134_vm10, %vm135_vm9 }
 0x12b   :  { %v131_v61 = vsub.f32 1.0, %v130_v59  ;;  %v149_v12 = vmul.f32 %v147_v6, %v127_v5 }
 0x12d   :  { %v132_v3 = vmul.f32 %v363_v56, %v131_v61  ;;  %v152_v17 = vadd.f32 %v151_v14, %v149_v12 }
 0x12f   :  { %v133_v7 = vadd.f32 %v363_v56, %v132_v3 }
 0x131   :  { %v137_v10 = vsel %vm136_vm11, %v363_v56, %v133_v7 }
 0x132   :  { %v142_v13 = vsel %vm139_vm12, %v141_v8, %v137_v10 }
 0x133   :  { %v150_v16 = vmul.f32 %v148_v9, %v142_v13 }
 0x135   :  { %v153_v18 = vadd.f32 %v151_v14, %v150_v16 }
 0x137   :  { %v342_v19 = vpack.c.bf16 %v153_v18, %v152_v17 }
 0x139   :  { %343 = vst [vmem:[#allocation2] sm:$0xff] %v342_v19  }
 0x140   :  { %v330_v20 = vld [vmem:[#allocation2] sm:$0xff] }
 0x141   :  { %242 = vmatmul.bf16.vlgmr.msra.gmra.mxu0 %v330_v20 }
 0x1be   :  { %v243_v22 = vpop.f32.mrf.mxu0 }
 0x1bf   :  { %v244_v23 = vadd.f32 %v353_v15, %v243_v22 }
 0x1c1   :  { %v256_v24 = vmul.f32 1.1111112, %v244_v23 }
 0x1c3   :  { %v258_v26 = vsel %vm252_vm13, %v256_v24, 0.0 }
 0x1c4   :  { %v266_v27 = vadd.f32 %v258_v26, %v507_v0 }
 0x1c6   :  { %268 = vst [vmem:[#allocation10] sm:$0xff] %v266_v27  ;;  %v245_v29 = vpop.f32.mrf.mxu0 }
 0x1c7   :  { %v246_v30 = vadd.f32 %v353_v15, %v245_v29 }
 0x1c9   :  { %v257_v31 = vmul.f32 1.1111112, %v246_v30 }
 0x1cb   :  { %v259_v32 = vsel %vm255_vm14, %v257_v31, 0.0 }
 0x1cc   :  { %v267_v33 = vadd.f32 %v259_v32, %v510_v1 }
 0x1ce   :  { %269 = vst [vmem:[#allocation10 + $0x8] sm:$0xff] %v267_v33 }
 0x1cf   :  { %282 = dma.vmem_to_hbm [thread:$0]  %s275_s3, 256, %s277_s19, [#allocation7], %s458_s29, %s458_s29, %s459_s30  }
 0x1d0   :  { %454 = dma.done.wait [#allocation7], 256  }
 0x1d1   :  { %455 = vsyncadd [#allocation7], 4294967040 }
 0x1d2   :  { %287 = vsyncpa [#allocation6], 1 }
 0x1d3   :  { %288 = vsyncpa [#allocation9], 1 }
 0x1d4   :  { %289 = vsyncpa [#allocation7], 1 }

</bundles_post_ra>
